<compile_context>
chip_gen: v5e
topology: v5e:2x2
jax: 0.10.0
libtpu: 0.0.40
codegen_flags: <defaults>
</compile_context>

<pallas_src>
import jax
import jax.numpy as jnp
import numpy as np
from jax.experimental import pallas as pl
from jax.experimental.pallas import tpu as pltpu


LANE = 128


def _round_up(n, m):
    return ((n + m - 1) // m) * m


def _mlp_kernel(x_ref, w1_ref, b1_ref, w2_ref, b2_ref, w3_ref, b3_ref, out_ref):
    # Layer 1: bf16 (tm, I) @ (I, Hp) on the MXU, f32 accumulate;
    # bias add + ReLU in f32 on the VPU.
    h = jnp.dot(x_ref[...], w1_ref[...], preferred_element_type=jnp.float32)
    h = jnp.maximum(h + b1_ref[...], 0.0)

    # Layer 2: cast to bf16 only at the MXU boundary (VPU work stays f32).
    h = jnp.dot(h.astype(w2_ref.dtype), w2_ref[...],
                preferred_element_type=jnp.float32)
    h = jnp.maximum(h + b2_ref[...], 0.0)

    # Layer 3: full-lane (tm, Cp) compute, then store only the real classes
    # (narrow masked vst -> minimal HBM writeback).
    logits = jnp.dot(h.astype(w3_ref.dtype), w3_ref[...],
                     preferred_element_type=jnp.float32)
    logits = logits + b3_ref[...]
    out_ref[...] = logits[:, :out_ref.shape[1]]


def _choose_tm(batch, block_m, row_align):
    """Row tile: big (amortize ~0.35us/step), >=2 steps when batch allows
    (v7x megacore), always a multiple of row_align."""
    target = max(row_align, min(block_m, batch // 2))
    tm = (target // row_align) * row_align
    return max(tm, row_align)


def neural_net_forward(x, kernel_params, num_classes, *, block_m=512):
    """x: (batch, input_size) float; kernel_params from make_params()."""
    (w1_t, b1), (w2_t, b2), (w3_t, b3) = kernel_params
    B, I = x.shape
    C = num_classes
    C_pad = w3_t.shape[1]

    # Matmul operands in the weights' dtype (bf16); f32 accumulate in-kernel.
    x = x.astype(w1_t.dtype)
    row_align = 16 if x.dtype == jnp.bfloat16 else 8

    tm = _choose_tm(B, block_m, row_align)
    grid_m = pl.cdiv(B, tm)
    B_pad = grid_m * tm
    if B_pad != B:
        x = jnp.pad(x, ((0, B_pad - B), (0, 0)))  # zero rows; sliced off below

    x_spec = pl.BlockSpec((tm, I), lambda i: (i, 0))
    out_spec = pl.BlockSpec((tm, C), lambda i: (i, 0))

    def whole(shape):
        return pl.BlockSpec(shape, lambda i, _n=len(shape): (0,) * _n)

    H_pad = w1_t.shape[1]
    flops = 2 * B_pad * (I * H_pad + H_pad * H_pad + H_pad * C_pad)
    bytes_accessed = (
        x.dtype.itemsize * B_pad * I
        + w1_t.dtype.itemsize * (I * H_pad + H_pad * H_pad + H_pad * C_pad)
        + 4 * (H_pad + H_pad + C_pad)
        + 4 * B_pad * C)
    cost = pl.CostEstimate(flops=flops, transcendentals=0,
                           bytes_accessed=bytes_accessed)

    out = pl.pallas_call(
        _mlp_kernel,
        out_shape=jax.ShapeDtypeStruct((B_pad, C), jnp.float32),
        grid=(grid_m,),
        in_specs=[x_spec,
                  whole(w1_t.shape), whole(b1.shape),
                  whole(w2_t.shape), whole(b2.shape),
                  whole(w3_t.shape), whole(b3.shape)],
        out_specs=out_spec,
        compiler_params=pltpu.CompilerParams(
            dimension_semantics=("parallel",)),
        cost_estimate=cost,
    )(x, w1_t, b1, w2_t, b2, w3_t, b3)

    return out if B_pad == B else out[:B]


def make_params(key, input_size, hidden_size, num_classes,
                *, param_dtype=jnp.bfloat16):
    """Deterministic init matching PyTorch nn.Linear, plus the one-time
    kernel layout work (transpose, lane-pad hidden/class dims, dtype cast)."""
    def linear(k, fan_in, fan_out):
        bound = 1.0 / np.sqrt(fan_in)
        kw, kb = jax.random.split(k)
        w = jax.random.uniform(kw, (fan_out, fan_in), jnp.float32, -bound, bound)
        b = jax.random.uniform(kb, (fan_out,), jnp.float32, -bound, bound)
        return w, b

    k1, k2, k3 = jax.random.split(key, 3)
    raw_params = (linear(k1, input_size, hidden_size),
                  linear(k2, hidden_size, hidden_size),
                  linear(k3, hidden_size, num_classes))

    H_pad = _round_up(hidden_size, LANE)
    C_pad = _round_up(num_classes, LANE)

    (w1, b1), (w2, b2), (w3, b3) = raw_params

    # Pre-transposed (in, out) layout; zero-pad hidden/class dims to full
    # 128-lane width (exact math: padded bias is 0, padded rows/cols are 0).
    w1_t = jnp.pad(w1.T, ((0, 0), (0, H_pad - hidden_size))).astype(param_dtype)
    b1_k = jnp.pad(b1, (0, H_pad - hidden_size)).reshape(1, -1)          # f32
    w2_t = jnp.pad(w2.T, ((0, H_pad - hidden_size),
                          (0, H_pad - hidden_size))).astype(param_dtype)
    b2_k = jnp.pad(b2, (0, H_pad - hidden_size)).reshape(1, -1)          # f32
    w3_t = jnp.pad(w3.T, ((0, H_pad - hidden_size),
                          (0, C_pad - num_classes))).astype(param_dtype)
    b3_k = jnp.pad(b3, (0, C_pad - num_classes)).reshape(1, -1)          # f32

    kernel_params = ((w1_t, b1_k), (w2_t, b2_k), (w3_t, b3_k))
    return kernel_params, raw_params


def reference_forward(x, raw_params):
    """Pure-JAX f32 reference reproducing the PyTorch forward semantics."""
    (w1, b1), (w2, b2), (w3, b3) = raw_params
    h = jnp.maximum(x @ w1.T + b1, 0.0)
    h = jnp.maximum(h @ w2.T + b2, 0.0)
    return h @ w3.T + b3


if __name__ == "__main__":
    # Small shapes consistent with the module (MNIST-tutorial-style MLP).
    batch, input_size, hidden_size, num_classes = 16, 64, 32, 10

    key = jax.random.PRNGKey(0)
    key, xkey = jax.random.split(key)
    x = jax.random.normal(xkey, (batch, input_size), dtype=jnp.float32)

    kernel_params, raw_params = make_params(
        key, input_size, hidden_size, num_classes)

    out = neural_net_forward(x, kernel_params, num_classes)
    out = jax.block_until_ready(out)

    ref = reference_forward(x, raw_params)
    # bf16 matmul operands (f32 accumulate) vs f32 reference -> relaxed tol.
    np.testing.assert_allclose(np.asarray(out), np.asarray(ref),
                               rtol=2e-2, atol=2e-2)
    assert out.shape == (batch, num_classes)

    print("KERNEL_OK")
</pallas_src>

<mosaic_0001>
module attributes {stable_mosaic.version = 11 : i64} {
  func.func @_mlp_kernel(%arg0: i32, %arg1: memref<16x64xbf16, #tpu.memory_space<vmem>>, %arg2: memref<64x128xbf16, #tpu.memory_space<vmem>>, %arg3: memref<1x128xf32, #tpu.memory_space<vmem>>, %arg4: memref<128x128xbf16, #tpu.memory_space<vmem>>, %arg5: memref<1x128xf32, #tpu.memory_space<vmem>>, %arg6: memref<128x128xbf16, #tpu.memory_space<vmem>>, %arg7: memref<1x128xf32, #tpu.memory_space<vmem>>, %arg8: memref<16x10xf32, #tpu.memory_space<vmem>>) attributes {dimension_semantics = [#tpu.dimension_semantics<parallel>], iteration_bounds = array<i64: 1>, scalar_prefetch = 0 : i64, scratch_operands = 0 : i64, tpu.core_type = #tpu.core_type<tc>, window_params = [{transform_indices = @transform_0, window_bounds = array<i64: 16, 64>}, {pipeline_mode = #tpu.pipeline_mode<synchronous>, transform_indices = @transform_1, window_bounds = array<i64: 64, 128>}, {pipeline_mode = #tpu.pipeline_mode<synchronous>, transform_indices = @transform_2, window_bounds = array<i64: 1, 128>}, {pipeline_mode = #tpu.pipeline_mode<synchronous>, transform_indices = @transform_3, window_bounds = array<i64: 128, 128>}, {pipeline_mode = #tpu.pipeline_mode<synchronous>, transform_indices = @transform_4, window_bounds = array<i64: 1, 128>}, {pipeline_mode = #tpu.pipeline_mode<synchronous>, transform_indices = @transform_5, window_bounds = array<i64: 128, 128>}, {pipeline_mode = #tpu.pipeline_mode<synchronous>, transform_indices = @transform_6, window_bounds = array<i64: 1, 128>}, {transform_indices = @transform_7, window_bounds = array<i64: 16, 10>}]} {
    %c0 = arith.constant 0 : index
    %c0_0 = arith.constant 0 : index
    %0 = vector.load %arg1[%c0, %c0_0] : memref<16x64xbf16, #tpu.memory_space<vmem>>, vector<16x64xbf16>
    %c0_1 = arith.constant 0 : index
    %c0_2 = arith.constant 0 : index
    %1 = vector.load %arg2[%c0_1, %c0_2] : memref<64x128xbf16, #tpu.memory_space<vmem>>, vector<64x128xbf16>
    %cst = arith.constant dense<0.000000e+00> : vector<16x128xf32>
    %2 = tpu.matmul %0, %1, %cst {dimension_numbers = #tpu.dot_dimension_numbers<[1], [0], [0], [1], [0, 0, 1, 1], [], []>} : vector<16x64xbf16>, vector<64x128xbf16>, vector<16x128xf32> -> vector<16x128xf32>
    %c0_3 = arith.constant 0 : index
    %c0_4 = arith.constant 0 : index
    %3 = vector.load %arg3[%c0_3, %c0_4] : memref<1x128xf32, #tpu.memory_space<vmem>>, vector<1x128xf32>
    %4 = vector.broadcast %3 : vector<1x128xf32> to vector<16x128xf32>
    %5 = arith.addf %2, %4 : vector<16x128xf32>
    %cst_5 = arith.constant 0.000000e+00 : f32
    %6 = vector.broadcast %cst_5 : f32 to vector<16x128xf32>
    %7 = arith.maximumf %5, %6 : vector<16x128xf32>
    %8 = arith.truncf %7 : vector<16x128xf32> to vector<16x128xbf16>
    %c0_6 = arith.constant 0 : index
    %c0_7 = arith.constant 0 : index
    %9 = vector.load %arg4[%c0_6, %c0_7] : memref<128x128xbf16, #tpu.memory_space<vmem>>, vector<128x128xbf16>
    %cst_8 = arith.constant dense<0.000000e+00> : vector<16x128xf32>
    %10 = tpu.matmul %8, %9, %cst_8 {dimension_numbers = #tpu.dot_dimension_numbers<[1], [0], [0], [1], [0, 0, 1, 1], [], []>} : vector<16x128xbf16>, vector<128x128xbf16>, vector<16x128xf32> -> vector<16x128xf32>
    %c0_9 = arith.constant 0 : index
    %c0_10 = arith.constant 0 : index
    %11 = vector.load %arg5[%c0_9, %c0_10] : memref<1x128xf32, #tpu.memory_space<vmem>>, vector<1x128xf32>
    %12 = vector.broadcast %11 : vector<1x128xf32> to vector<16x128xf32>
    %13 = arith.addf %10, %12 : vector<16x128xf32>
    %cst_11 = arith.constant 0.000000e+00 : f32
    %14 = vector.broadcast %cst_11 : f32 to vector<16x128xf32>
    %15 = arith.maximumf %13, %14 : vector<16x128xf32>
    %16 = arith.truncf %15 : vector<16x128xf32> to vector<16x128xbf16>
    %c0_12 = arith.constant 0 : index
    %c0_13 = arith.constant 0 : index
    %17 = vector.load %arg6[%c0_12, %c0_13] : memref<128x128xbf16, #tpu.memory_space<vmem>>, vector<128x128xbf16>
    %cst_14 = arith.constant dense<0.000000e+00> : vector<16x128xf32>
    %18 = tpu.matmul %16, %17, %cst_14 {dimension_numbers = #tpu.dot_dimension_numbers<[1], [0], [0], [1], [0, 0, 1, 1], [], []>} : vector<16x128xbf16>, vector<128x128xbf16>, vector<16x128xf32> -> vector<16x128xf32>
    %c0_15 = arith.constant 0 : index
    %c0_16 = arith.constant 0 : index
    %19 = vector.load %arg7[%c0_15, %c0_16] : memref<1x128xf32, #tpu.memory_space<vmem>>, vector<1x128xf32>
    %20 = vector.broadcast %19 : vector<1x128xf32> to vector<16x128xf32>
    %21 = arith.addf %18, %20 : vector<16x128xf32>
    %22 = vector.extract_strided_slice %21 {offsets = [0, 0], sizes = [16, 10], strides = [1, 1]} : vector<16x128xf32> to vector<16x10xf32>
    %c0_17 = arith.constant 0 : index
    %c0_18 = arith.constant 0 : index
    %23 = vector.load %arg8[%c0_17, %c0_18] : memref<16x10xf32, #tpu.memory_space<vmem>>, vector<16x10xf32>
    tpu.vector_store %arg8[%c0_17, %c0_18], %22 {strides = array<i32>} : memref<16x10xf32, #tpu.memory_space<vmem>>, vector<16x10xf32>,
    return
  }
  func.func @transform_0(%arg0: i32) -> (i32, i32) {
    %c0_i32 = arith.constant 0 : i32
    %c0_i32_0 = arith.constant 0 : i32
    return %arg0, %c0_i32 : i32, i32
  }
  func.func @transform_1(%arg0: i32) -> (i32, i32) {
    %c0_i32 = arith.constant 0 : i32
    %c0_i32_0 = arith.constant 0 : i32
    %c0_i32_1 = arith.constant 0 : i32
    return %c0_i32, %c0_i32_0 : i32, i32
  }
  func.func @transform_2(%arg0: i32) -> (i32, i32) {
    %c0_i32 = arith.constant 0 : i32
    %c0_i32_0 = arith.constant 0 : i32
    %c0_i32_1 = arith.constant 0 : i32
    return %c0_i32, %c0_i32_0 : i32, i32
  }
  func.func @transform_3(%arg0: i32) -> (i32, i32) {
    %c0_i32 = arith.constant 0 : i32
    %c0_i32_0 = arith.constant 0 : i32
    %c0_i32_1 = arith.constant 0 : i32
    return %c0_i32, %c0_i32_0 : i32, i32
  }
  func.func @transform_4(%arg0: i32) -> (i32, i32) {
    %c0_i32 = arith.constant 0 : i32
    %c0_i32_0 = arith.constant 0 : i32
    %c0_i32_1 = arith.constant 0 : i32
    return %c0_i32, %c0_i32_0 : i32, i32
  }
  func.func @transform_5(%arg0: i32) -> (i32, i32) {
    %c0_i32 = arith.constant 0 : i32
    %c0_i32_0 = arith.constant 0 : i32
    %c0_i32_1 = arith.constant 0 : i32
    return %c0_i32, %c0_i32_0 : i32, i32
  }
  func.func @transform_6(%arg0: i32) -> (i32, i32) {
    %c0_i32 = arith.constant 0 : i32
    %c0_i32_0 = arith.constant 0 : i32
    %c0_i32_1 = arith.constant 0 : i32
    return %c0_i32, %c0_i32_0 : i32, i32
  }
  func.func @transform_7(%arg0: i32) -> (i32, i32) {
    %c0_i32 = arith.constant 0 : i32
    %c0_i32_0 = arith.constant 0 : i32
    return %arg0, %c0_i32 : i32, i32
  }
}

</mosaic_0001>

<bundles_post_ra>
// kernel: tpu_custom_call.1
= control target key start
LH: loop header
LB: loop body
LE: loop exit
PB: predicated region body
PF: predicated region fallthrough
CT: control target
= control target key end

     0   :  { %12 = vsyncpa [#allocation3], 0  ;;  %s665_s0 = inlined_call_operand.hbm [shape: bf16[16,64], index: 0, kind: input, shape index: {}]   ;;  %s666_s1 = inlined_call_operand.hbm [shape: bf16[64,128], index: 1, kind: input, shape index: {}]   ;;  %s667_s2 = inlined_call_operand.vmem [shape: f32[1,128], index: 2, kind: input, shape index: {}]   ;;  %s668_s3 = inlined_call_operand.hbm [shape: bf16[128,128], index: 3, kind: input, shape index: {}]   ;;  %s669_s4 = inlined_call_operand.vmem [shape: f32[1,128], index: 4, kind: input, shape index: {}]   ;;  %s670_s5 = inlined_call_operand.hbm [shape: bf16[128,128], index: 5, kind: input, shape index: {}]   ;;  %s671_s6 = inlined_call_operand.vmem [shape: f32[1,128], index: 6, kind: input, shape index: {}]   ;;  %s672_s7 = inlined_call_operand.hbm [shape: f32[16,10], index: 7, kind: output, shape index: {}]  }
   0x1   :  { %13 = vsyncpa [#allocation6], 0 }
   0x2   :  { %14 = vsyncpa [#allocation9], 0 }
   0x3   :  { %15 = vsyncpa [#allocation4], 0  ;;  %s33_s26 = sshll.u32 %s666_s1, 4  ;;  %s592_s27 = smov [#allocation5]   ;;  %s34_s26 = int_to_ptr.hbm [resolvable:$true] %s33_s26 }
   0x4   :  { %s35_s28 = sshll.u32 %s592_s27, 4  ;;  %s20_s8 = sshll.u32 %s665_s0, 4  ;;  %s36_s28 = int_to_ptr.vmem [resolvable:$true] %s35_s28  ;;  %s21_s8 = int_to_ptr.hbm [resolvable:$true] %s20_s8 }
   0x5   :  { %s593_s9 = smov 64   ;;  %s594_s10 = smov 4  }
   0x6   :  { %41 = dma.hbm_to_vmem [thread:$0]  %s34_s26, 512, %s36_s28, [#allocation6], %s593_s9, %s593_s9, %s594_s10  }
   0x7   :  { %s595_s11 = smov [#allocation2]   ;;  %s48_s15 = sshll.u32 %s668_s3, 4  ;;  %s49_s15 = int_to_ptr.hbm [resolvable:$true] %s48_s15 }
   0x8   :  { %s22_s12 = sshll.u32 %s595_s11, 4  ;;  %s63_s17 = sshll.u32 %s670_s5, 4  ;;  %s23_s12 = int_to_ptr.vmem [resolvable:$true] %s22_s12  ;;  %s64_s17 = int_to_ptr.hbm [resolvable:$true] %s63_s17 }
   0x9   :  { %28 = dma.hbm_to_vmem [thread:$0]  %s21_s8, 128, %s23_s12, [#allocation3], %s593_s9, %s593_s9, %s594_s10  }
   0xa   :  { %s596_s18 = smov [#allocation7]   ;;  %s597_s0 = smov [#allocation8]  }
   0xb   :  { %s50_s19 = sshll.u32 %s596_s18, 4  ;;  %s65_s20 = sshll.u32 %s597_s0, 4  ;;  %s51_s19 = int_to_ptr.vmem [resolvable:$true] %s50_s19  ;;  %s66_s20 = int_to_ptr.vmem [resolvable:$true] %s65_s20 }
   0xc   :  { %56 = dma.hbm_to_vmem [thread:$0]  %s49_s15, 1024, %s51_s19, [#allocation6], %s593_s9, %s593_s9, %s594_s10  }
   0xd   :  { %71 = dma.hbm_to_vmem [thread:$0]  %s64_s17, 1024, %s66_s20, [#allocation9], %s593_s9, %s593_s9, %s594_s10  }
   0xe   :  { %584 = dma.done.wait [#allocation3], 128  }
   0xf   :  { %585 = vsyncadd [#allocation3], 4294967168 }
  0x10   :  { %586 = dma.done.wait [#allocation6], 1536  }
  0x11   :  { %587 = vsyncadd [#allocation6], 4294965760 }
  0x12   :  { %588 = dma.done.wait [#allocation9], 1024  }
  0x13   :  { %589 = vsyncadd [#allocation9], 4294966272  ;;  %v435_v0 = vld [vmem:[#allocation5 + $0x18] sm:$0xff]  ;;  %v434_v2 = vld [vmem:[#allocation5 + $0x10] sm:$0xff]  ;;  %vm134_vm0 = vcmask 523264   ;;  %vm322_vm1 = vcmask 80896  }
  0x14   :  { %v443_v1 = vld [vmem:[#allocation7 + $0x38] sm:$0xff]  ;;  %142 = vmatpush.bf16.msra.mxu0 %v435_v0  ;;  %v442_v3 = vld [vmem:[#allocation7 + $0x30] sm:$0xff]  ;;  %v433_v4 = vld [vmem:[#allocation5 + $0x8] sm:$0xff]  ;;  %s598_s24 = smov [#allocation10]   ;;  %s599_s28 = smov 128  }
  0x15   :  { %223 = vmatpush.bf16.msra.mxu1 %v443_v1  ;;  %v441_v5 = vld [vmem:[#allocation7 + $0x28] sm:$0xff]  ;;  %v432_v6 = vld [vmem:[#allocation5] sm:$0xff]  ;;  %v431_v8 = vld [vmem:[#allocation2] sm:$0xff]  ;;  %s329_s25 = sshll.u32 %s598_s24, 4  ;;  %s600_s29 = smov 8   ;;  %s330_s25 = int_to_ptr.vmem [resolvable:$true] %s329_s25 }
  0x16   :  { %v440_v7 = vld [vmem:[#allocation7 + $0x20] sm:$0xff]  ;;  %v439_v9 = vld [vmem:[#allocation7 + $0x18] sm:$0xff]  ;;  %v438_v10 = vld [vmem:[#allocation7 + $0x10] sm:$0xff] }
  0x17   :  { %v437_v11 = vld [vmem:[#allocation7 + $0x8] sm:$0xff]  ;;  %v436_v12 = vld [vmem:[#allocation7] sm:$0xff]  ;;  %v451_v13 = vld [vmem:[#allocation8 + $0x38] sm:$0xff] }
  0x18   :  { %143 = vmatpush.bf16.msra.mxu0 %v434_v2  ;;  %308 = vmatpush.bf16.msra.mxu2 %v451_v13  ;;  %v450_v14 = vld [vmem:[#allocation8 + $0x30] sm:$0xff]  ;;  %v449_v15 = vld [vmem:[#allocation8 + $0x28] sm:$0xff]  ;;  %v448_v16 = vld [vmem:[#allocation8 + $0x20] sm:$0xff] }
  0x19   :  { %224 = vmatpush.bf16.msra.mxu1 %v442_v3  ;;  %v461_v18 = vld [vmem:[%s667_s2] ss:$0 sm:$0xff]  ;;  %v446_v26 = vld [vmem:[#allocation8 + $0x10] sm:$0xff]  ;;  %v445_v27 = vld [vmem:[#allocation8 + $0x8] sm:$0xff] }
  0x1a   :  { %v447_v25 = vld [vmem:[#allocation8 + $0x18] sm:$0xff]  ;;  %v444_v28 = vld [vmem:[#allocation8] sm:$0xff] }
  0x1b   :  { %v462_v30 = vld [vmem:[%s669_s4] ss:$0 sm:$0xff]  ;;  %s331_s4 = sshll.u32 %s672_s7, 4  ;;  %s332_s4 = int_to_ptr.hbm [resolvable:$true] %s331_s4 }
  0x1c   :  { %144 = vmatpush.bf16.msra.mxu0 %v433_v4  ;;  %309 = vmatpush.bf16.msra.mxu2 %v450_v14  ;;  %v463_v37 = vld [vmem:[%s671_s6] ss:$0 sm:$0xff] }
  0x1d   :  { %225 = vmatpush.bf16.msra.mxu1 %v441_v5 }
  0x20   :  { %145 = vmatpush.bf16.msra.mxu0 %v432_v6  ;;  %310 = vmatpush.bf16.msra.mxu2 %v449_v15 }
  0x21   :  { %226 = vmatpush.bf16.msra.mxu1 %v440_v7 }
  0x23   :  { %366 = vmatmul.msk.bf16.vlgmr.msra.gmra.mxu0 %vm134_vm0, %v431_v8 }
  0x24   :  { %311 = vmatpush.bf16.msra.mxu2 %v448_v16 }
  0x25   :  { %227 = vmatpush.bf16.msra.mxu1 %v439_v9 }
  0x28   :  { %312 = vmatpush.bf16.msra.mxu2 %v447_v25 }
  0x29   :  { %228 = vmatpush.bf16.msra.mxu1 %v438_v10 }
  0x2c   :  { %313 = vmatpush.bf16.msra.mxu2 %v446_v26 }
  0x2d   :  { %229 = vmatpush.bf16.msra.mxu1 %v437_v11 }
  0x30   :  { %314 = vmatpush.bf16.msra.mxu2 %v445_v27 }
  0x31   :  { %230 = vmatpush.bf16.msra.mxu1 %v436_v12 }
  0x34   :  { %315 = vmatpush.bf16.msra.mxu2 %v444_v28 }
  0xa0   :  { %v147_v17 = vpop.f32.mrf.mxu0 }
  0xa1   :  { %v148_v19 = vadd.f32 %v461_v18, %v147_v17 }
  0xa3   :  { %v152_v22 = vmax.f32 %v148_v19, 0.0 }
  0xa8   :  { %v149_v20 = vpop.f32.mrf.mxu0 }
  0xa9   :  { %v150_v21 = vadd.f32 %v461_v18, %v149_v20 }
  0xab   :  { %v153_v23 = vmax.f32 %v150_v21, 0.0 }
  0xad   :  { %v154_v24 = vpack.c.bf16 %v153_v23, %v152_v22 }
  0xaf   :  { %231 = vmatmul.bf16.vlgmr.msra.gmra.mxu1 %v154_v24 }
 0x12c   :  { %v232_v29 = vpop.f32.mrf.mxu1 }
 0x12d   :  { %v233_v31 = vadd.f32 %v462_v30, %v232_v29 }
 0x12f   :  { %v237_v34 = vmax.f32 %v233_v31, 0.0 }
 0x134   :  { %v234_v32 = vpop.f32.mrf.mxu1 }
 0x135   :  { %v235_v33 = vadd.f32 %v462_v30, %v234_v32 }
 0x137   :  { %v238_v35 = vmax.f32 %v235_v33, 0.0 }
 0x139   :  { %v239_v36 = vpack.c.bf16 %v238_v35, %v237_v34 }
 0x13b   :  { %316 = vmatmul.bf16.vlgmr.msra.gmra.mxu2 %v239_v36 }
 0x1be   :  { %v317_v38 = vpop.f32.mrf.mxu2 }
 0x1bf   :  { %v318_v39 = vadd.f32 %v463_v37, %v317_v38 }
 0x1c1   :  { %323 = vst.msk [vmem:[#allocation10] sm:$0xff] %vm322_vm1, %v318_v39 }
 0x1c6   :  { %v319_v40 = vpop.f32.mrf.mxu2 }
 0x1c7   :  { %v320_v41 = vadd.f32 %v463_v37, %v319_v40 }
 0x1c9   :  { %324 = vst.msk [vmem:[#allocation10 + $0x8] sm:$0xff] %vm322_vm1, %v320_v41 }
 0x1ca   :  { %337 = dma.vmem_to_hbm [thread:$0]  %s330_s25, 256, %s332_s4, [#allocation4], %s599_s28, %s599_s28, %s600_s29  }
 0x1cb   :  { %590 = dma.done.wait [#allocation4], 256  }
 0x1cc   :  { %591 = vsyncadd [#allocation4], 4294967040 }
 0x1cd   :  { %342 = vsyncpa [#allocation3], 1 }
 0x1ce   :  { %343 = vsyncpa [#allocation6], 1 }
 0x1cf   :  { %344 = vsyncpa [#allocation9], 1 }
 0x1d0   :  { %345 = vsyncpa [#allocation4], 1 }

</bundles_post_ra>
